<compile_context>
chip_gen: v7x
topology: tpu7x:2x2x1
jax: 0.10.0
libtpu: 0.0.40
codegen_flags: <defaults>
</compile_context>

<pallas_src>
import math

import jax
import jax.numpy as jnp
from jax import lax
from jax.experimental import pallas as pl
from jax.experimental.pallas import tpu as pltpu

# ----------------------------- problem sizes -------------------------------
B = 2          # batch
S = 8          # sequence length
E = 32         # embedding_dim
H = 4          # num_heads
D = E // H     # head dim
M = 64         # mlp_size
EPS = 1e-5
NEG_BIG = -1e30   # finite stand-in for -inf (same softmax result when any key is unmasked)

AUX_ROWS = 4 + B   # rows: bqkv' | bo | b1' | b2 | mask-bias (B rows)
AUX_COLS = 128     # one lane tile


def _normalize(x):
    # LayerNorm with gamma/beta folded into the downstream matmul on the host:
    # only the pure normalization remains on the critical path.
    mu = jnp.mean(x, axis=-1, keepdims=True)
    xc = x - mu
    var = jnp.mean(xc * xc, axis=-1, keepdims=True)
    return xc * lax.rsqrt(var + EPS)


def _gelu_exact(x):
    # nn.GELU() default (approximate='none'): 0.5*x*(1+erf(x/sqrt(2)))
    return 0.5 * x * (1.0 + lax.erf(x * (1.0 / math.sqrt(2.0))))


def encoder_block_kernel(
    x_ref,      # (B*S, E)
    w_ref,      # (E, 4E+M) = [Wqkv' (head-interleaved, LN1-folded, q prescaled) | Wo | W1' (LN2-folded)]
    w2_ref,     # (M, E)
    aux_ref,    # (4+B, 128): row0 bqkv'(3E), row1 bo(E), row2 b1'(M), row3 b2(E), rows 4:4+B mask bias (B,S)
    o_ref,      # (B*S, E)
):
    x = x_ref[...]                      # (16, 32)
    w = w_ref[...]                      # (32, 192)
    aux = aux_ref[...]

    bqkv = aux[0:1, 0:3 * E]            # (1, 3E), head-interleaved [q|k|v] per head
    bo = aux[1:2, 0:E]
    b1 = aux[2:3, 0:M]
    b2 = aux[3:4, 0:E]
    mask = aux[4:4 + B, 0:S]            # (B, S) additive key-padding bias (0 / NEG_BIG)

    # ---------------- MultiheadSelfAttentionBlock ----------------
    n1 = _normalize(x)                                          # LN1 (affine folded)
    qkv = jnp.dot(n1, w[:, 0:3 * E],
                  preferred_element_type=jnp.float32) + bqkv    # (B*S, 3E)

    # single head relayout for q,k,v combined (columns are interleaved per head)
    t = qkv.reshape(B, S, H, 3 * D).transpose(0, 2, 1, 3).reshape(B * H, S, 3 * D)
    q = t[:, :, 0:D]
    k = t[:, :, D:2 * D]
    v = t[:, :, 2 * D:3 * D]

    scores = jnp.einsum("bqd,bkd->bqk", q, k,
                        preferred_element_type=jnp.float32)     # (B*H, S, S)
    mask_bh = jnp.broadcast_to(mask.reshape(B, 1, 1, S),
                               (B, H, 1, S)).reshape(B * H, 1, S)
    scores = scores + mask_bh
    scores = scores - jnp.max(scores, axis=-1, keepdims=True)
    p = jnp.exp(scores)
    denom = jnp.sum(p, axis=-1, keepdims=True)
    r = pl.reciprocal(denom, approx=True)                       # EUP fast path
    r = r * (2.0 - denom * r)                                   # one Newton step (VPU)
    p = p * r
    ctx = jnp.einsum("bqk,bkd->bqd", p, v,
                     preferred_element_type=jnp.float32)        # (B*H, S, D)
    ctx = ctx.reshape(B, H, S, D).transpose(0, 2, 1, 3).reshape(B * S, E)

    attn = jnp.dot(ctx, w[:, 3 * E:4 * E],
                   preferred_element_type=jnp.float32) + bo
    x1 = x + attn                                               # residual 1

    # ------------------------- MLPBlock ---------------------------
    n2 = _normalize(x1)                                         # LN2 (affine folded)
    a = jnp.dot(n2, w[:, 4 * E:], preferred_element_type=jnp.float32) + b1
    a = _gelu_exact(a)
    # TODO(synk): dropout layers are identity (eval-mode semantics); no RNG dropout.
    y = jnp.dot(a, w2_ref[...], preferred_element_type=jnp.float32) + b2

    o_ref[...] = x1 + y                                         # residual 2


def pack_params(params):
    """One-time (param-load-time) weight packing: LN folding, q prescale, head
    interleaving, and bias packing into a single (8,128)-tile aux slab."""
    (ln1_g, ln1_b, wq, bq, wk, bk, wv, bv, wo, bo,
     ln2_g, ln2_b, w1, b1, w2, b2) = params

    scale = 1.0 / math.sqrt(D)
    g1 = ln1_g.reshape(E, 1)

    # fold LN1 affine (+ 1/sqrt(D) score scaling into q) into weights/biases
    wq_f = g1 * (wq * scale)
    bq_f = ln1_b @ (wq * scale) + bq * scale
    wk_f = g1 * wk
    bk_f = ln1_b @ wk + bk
    wv_f = g1 * wv
    bv_f = ln1_b @ wv + bv

    # interleave q/k/v output columns per head: col = h*(3D) + {q,k,v}*D + d,
    # so the kernel needs only ONE reshape+transpose for all of q,k,v.
    wqkv = jnp.stack([wq_f.reshape(E, H, D), wk_f.reshape(E, H, D),
                      wv_f.reshape(E, H, D)], axis=2).reshape(E, 3 * E)
    bqkv = jnp.stack([bq_f.reshape(1, H, D), bk_f.reshape(1, H, D),
                      bv_f.reshape(1, H, D)], axis=2).reshape(1, 3 * E)

    # fold LN2 affine into W1/b1
    g2 = ln2_g.reshape(E, 1)
    w1_f = g2 * w1
    b1_f = ln2_b @ w1 + b1

    big_w = jnp.concatenate([wqkv, wo, w1_f], axis=1)           # (E, 4E+M) = (32, 192)

    aux_static = jnp.zeros((AUX_ROWS, AUX_COLS), jnp.float32)
    aux_static = aux_static.at[0, 0:3 * E].set(bqkv[0])
    aux_static = aux_static.at[1, 0:E].set(bo[0])
    aux_static = aux_static.at[2, 0:M].set(b1_f[0])
    aux_static = aux_static.at[3, 0:E].set(b2[0])
    # rows 4:4+B are filled per-call with the mask bias

    return big_w, w2, aux_static


@jax.jit
def transformer_encoder_block(x, mask_bool, packed):
    big_w, w2, aux_static = packed

    # key_padding_mask -> additive bias (B, S); packed into the aux slab
    mask_bias = jnp.where(mask_bool, NEG_BIG, 0.0).astype(jnp.float32)
    aux = aux_static.at[4:4 + B, 0:S].set(mask_bias)

    vmem = lambda: pl.BlockSpec(memory_space=pltpu.MemorySpace.VMEM)
    out2d = pl.pallas_call(
        encoder_block_kernel,
        out_shape=jax.ShapeDtypeStruct((B * S, E), jnp.float32),
        in_specs=[vmem() for _ in range(4)],
        out_specs=vmem(),
    )(x.reshape(B * S, E), big_w, w2, aux)
    return out2d.reshape(B, S, E)


# ----------------------- pure-JAX reference (for checking) ------------------
def reference(x, mask_bool, params):
    (ln1_g, ln1_b, wq, bq, wk, bk, wv, bv, wo, bo,
     ln2_g, ln2_b, w1, b1, w2, b2) = params

    def ln(z, g, b):
        mu = jnp.mean(z, axis=-1, keepdims=True)
        var = jnp.mean((z - mu) ** 2, axis=-1, keepdims=True)
        return (z - mu) / jnp.sqrt(var + EPS) * g + b

    h = ln(x, ln1_g, ln1_b)
    q = h @ wq + bq
    k = h @ wk + bk
    v = h @ wv + bv
    qh = q.reshape(B, S, H, D).transpose(0, 2, 1, 3)
    kh = k.reshape(B, S, H, D).transpose(0, 2, 1, 3)
    vh = v.reshape(B, S, H, D).transpose(0, 2, 1, 3)
    scores = jnp.einsum("bhqd,bhkd->bhqk", qh, kh) / math.sqrt(D)
    bias = jnp.where(mask_bool, -jnp.inf, 0.0)[:, None, None, :]
    scores = scores + bias
    p = jax.nn.softmax(scores, axis=-1)
    attn = jnp.einsum("bhqk,bhkd->bhqd", p, vh).transpose(0, 2, 1, 3).reshape(B, S, E)
    attn = attn @ wo + bo
    x1 = x + attn
    h2 = ln(x1, ln2_g, ln2_b)
    z = h2 @ w1 + b1
    a = 0.5 * z * (1.0 + lax.erf(z / math.sqrt(2.0)))
    y = a @ w2 + b2
    return x1 + y


if __name__ == "__main__":
    key = jax.random.PRNGKey(0)
    ks = jax.random.split(key, 12)

    x = jax.random.normal(ks[0], (B, S, E), jnp.float32)
    # key_padding_mask: True = ignore that key position
    mask_bool = jnp.zeros((B, S), dtype=bool).at[0, 6:].set(True)

    init = lambda k, shp: (jax.random.normal(k, shp, jnp.float32) * 0.05)
    params = (
        jnp.ones((1, E), jnp.float32),             # ln1 gamma
        jnp.zeros((1, E), jnp.float32),            # ln1 beta
        init(ks[1], (E, E)), init(ks[2], (1, E)),  # Wq^T, bq
        init(ks[3], (E, E)), init(ks[4], (1, E)),  # Wk^T, bk
        init(ks[5], (E, E)), init(ks[6], (1, E)),  # Wv^T, bv
        init(ks[7], (E, E)), init(ks[8], (1, E)),  # Wo^T, bo
        jnp.ones((1, E), jnp.float32),             # ln2 gamma
        jnp.zeros((1, E), jnp.float32),            # ln2 beta
        init(ks[9], (E, M)), jnp.zeros((1, M), jnp.float32),   # W1^T, b1
        init(ks[10], (M, E)), jnp.zeros((1, E), jnp.float32),  # W2^T, b2
    )

    packed = pack_params(params)          # one-time, out of the per-call path
    out = transformer_encoder_block(x, mask_bool, packed)
    out = jax.block_until_ready(out)

    ref = reference(x, mask_bool, params)
    assert out.shape == (B, S, E)
    assert jnp.allclose(out, ref, atol=1e-4, rtol=1e-4), "mismatch vs reference"
    print("KERNEL_OK")
</pallas_src>

<mosaic_0001>
module attributes {stable_mosaic.version = 11 : i64} {
  func.func @encoder_block_kernel(%arg0: memref<16x32xf32, #tpu.memory_space<vmem>>, %arg1: memref<32x192xf32, #tpu.memory_space<vmem>>, %arg2: memref<64x32xf32, #tpu.memory_space<vmem>>, %arg3: memref<6x128xf32, #tpu.memory_space<vmem>>, %arg4: memref<16x32xf32, #tpu.memory_space<vmem>>) attributes {dimension_semantics = [], scalar_prefetch = 0 : i64, scratch_operands = 0 : i64, tpu.core_type = #tpu.core_type<tc>} {
    %c0 = arith.constant 0 : index
    %c0_0 = arith.constant 0 : index
    %0 = vector.load %arg0[%c0, %c0_0] : memref<16x32xf32, #tpu.memory_space<vmem>>, vector<16x32xf32>
    %c0_1 = arith.constant 0 : index
    %c0_2 = arith.constant 0 : index
    %1 = vector.load %arg1[%c0_1, %c0_2] : memref<32x192xf32, #tpu.memory_space<vmem>>, vector<32x192xf32>
    %c0_3 = arith.constant 0 : index
    %c0_4 = arith.constant 0 : index
    %2 = vector.load %arg3[%c0_3, %c0_4] : memref<6x128xf32, #tpu.memory_space<vmem>>, vector<6x128xf32>
    %3 = vector.extract_strided_slice %2 {offsets = [0, 0], sizes = [1, 96], strides = [1, 1]} : vector<6x128xf32> to vector<1x96xf32>
    %4 = vector.extract_strided_slice %2 {offsets = [1, 0], sizes = [1, 32], strides = [1, 1]} : vector<6x128xf32> to vector<1x32xf32>
    %5 = vector.extract_strided_slice %2 {offsets = [2, 0], sizes = [1, 64], strides = [1, 1]} : vector<6x128xf32> to vector<1x64xf32>
    %6 = vector.extract_strided_slice %2 {offsets = [3, 0], sizes = [1, 32], strides = [1, 1]} : vector<6x128xf32> to vector<1x32xf32>
    %7 = vector.extract_strided_slice %2 {offsets = [4, 0], sizes = [2, 8], strides = [1, 1]} : vector<6x128xf32> to vector<2x8xf32>
    %cst = arith.constant dense<0.000000e+00> : vector<16xf32>
    %8 = vector.multi_reduction <add>, %0, %cst [1] : vector<16x32xf32> to vector<16xf32>
    %9 = vector.shape_cast %8 : vector<16xf32> to vector<16x1xf32>
    %cst_5 = arith.constant 3.200000e+01 : f32
    %10 = vector.broadcast %cst_5 : f32 to vector<16x1xf32>
    %11 = arith.divf %9, %10 : vector<16x1xf32>
    %12 = vector.broadcast %11 : vector<16x1xf32> to vector<16x32xf32>
    %13 = arith.subf %0, %12 : vector<16x32xf32>
    %14 = arith.mulf %13, %13 : vector<16x32xf32>
    %cst_6 = arith.constant dense<0.000000e+00> : vector<16xf32>
    %15 = vector.multi_reduction <add>, %14, %cst_6 [1] : vector<16x32xf32> to vector<16xf32>
    %16 = vector.shape_cast %15 : vector<16xf32> to vector<16x1xf32>
    %cst_7 = arith.constant 3.200000e+01 : f32
    %17 = vector.broadcast %cst_7 : f32 to vector<16x1xf32>
    %18 = arith.divf %16, %17 : vector<16x1xf32>
    %cst_8 = arith.constant 9.99999974E-6 : f32
    %19 = vector.broadcast %cst_8 : f32 to vector<16x1xf32>
    %20 = arith.addf %18, %19 : vector<16x1xf32>
    %21 = math.rsqrt %20 : vector<16x1xf32>
    %22 = vector.broadcast %21 : vector<16x1xf32> to vector<16x32xf32>
    %23 = arith.mulf %13, %22 : vector<16x32xf32>
    %24 = vector.extract_strided_slice %1 {offsets = [0, 0], sizes = [32, 96], strides = [1, 1]} : vector<32x192xf32> to vector<32x96xf32>
    %cst_9 = arith.constant dense<0.000000e+00> : vector<16x96xf32>
    %25 = tpu.matmul %23, %24, %cst_9 {dimension_numbers = #tpu.dot_dimension_numbers<[1], [0], [0], [1], [0, 0, 1, 1], [], []>} : vector<16x32xf32>, vector<32x96xf32>, vector<16x96xf32> -> vector<16x96xf32>
    %26 = vector.broadcast %3 : vector<1x96xf32> to vector<16x96xf32>
    %27 = arith.addf %25, %26 : vector<16x96xf32>
    %28 = vector.shape_cast %27 : vector<16x96xf32> to vector<2x8x4x24xf32>
    %29 = tpu.transpose %28, [0, 2, 1, 3] : vector<2x8x4x24xf32> -> vector<2x4x8x24xf32>
    %30 = vector.shape_cast %29 : vector<2x4x8x24xf32> to vector<8x8x24xf32>
    %31 = vector.extract_strided_slice %30 {offsets = [0, 0, 0], sizes = [8, 8, 8], strides = [1, 1, 1]} : vector<8x8x24xf32> to vector<8x8x8xf32>
    %32 = vector.extract_strided_slice %30 {offsets = [0, 0, 8], sizes = [8, 8, 8], strides = [1, 1, 1]} : vector<8x8x24xf32> to vector<8x8x8xf32>
    %33 = vector.extract_strided_slice %30 {offsets = [0, 0, 16], sizes = [8, 8, 8], strides = [1, 1, 1]} : vector<8x8x24xf32> to vector<8x8x8xf32>
    "tpu.trace_start"() <{level = 10 : i32, message = "bqd,bkd->bqk"}> : () -> ()
    %cst_10 = arith.constant dense<0.000000e+00> : vector<8x8x8xf32>
    %34 = tpu.matmul %31, %32, %cst_10 {dimension_numbers = #tpu.dot_dimension_numbers<[2], [2], [1], [1], [0, 0, 0, 1, 1, 1], [0], [0]>} : vector<8x8x8xf32>, vector<8x8x8xf32>, vector<8x8x8xf32> -> vector<8x8x8xf32>
    "tpu.trace_stop"() : () -> ()
    %35 = vector.shape_cast %7 : vector<2x8xf32> to vector<2x1x1x8xf32>
    %36 = vector.shape_cast %35 : vector<2x1x1x8xf32> to vector<2x1x1x8xf32>
    %37 = vector.broadcast %36 : vector<2x1x1x8xf32> to vector<2x4x1x8xf32>
    %38 = vector.shape_cast %37 : vector<2x4x1x8xf32> to vector<8x1x8xf32>
    %39 = vector.broadcast %38 : vector<8x1x8xf32> to vector<8x8x8xf32>
    %40 = arith.addf %34, %39 : vector<8x8x8xf32>
    %cst_11 = arith.constant dense<0xFF800000> : vector<8x8xf32>
    %41 = vector.multi_reduction <maximumf>, %40, %cst_11 [2] : vector<8x8x8xf32> to vector<8x8xf32>
    %42 = vector.shape_cast %41 : vector<8x8xf32> to vector<8x8x1xf32>
    %43 = vector.broadcast %42 : vector<8x8x1xf32> to vector<8x8x8xf32>
    %44 = arith.subf %40, %43 : vector<8x8x8xf32>
    %45 = math.exp %44 : vector<8x8x8xf32>
    %cst_12 = arith.constant dense<0.000000e+00> : vector<8x8xf32>
    %46 = vector.multi_reduction <add>, %45, %cst_12 [2] : vector<8x8x8xf32> to vector<8x8xf32>
    %47 = vector.shape_cast %46 : vector<8x8xf32> to vector<8x8x1xf32>
    %48 = tpu.reciprocal %47 {approx = true} : vector<8x8x1xf32> -> vector<8x8x1xf32>
    %49 = arith.mulf %47, %48 : vector<8x8x1xf32>
    %cst_13 = arith.constant 2.000000e+00 : f32
    %50 = vector.broadcast %cst_13 : f32 to vector<8x8x1xf32>
    %51 = arith.subf %50, %49 : vector<8x8x1xf32>
    %52 = arith.mulf %48, %51 : vector<8x8x1xf32>
    %53 = vector.broadcast %52 : vector<8x8x1xf32> to vector<8x8x8xf32>
    %54 = arith.mulf %45, %53 : vector<8x8x8xf32>
    "tpu.trace_start"() <{level = 10 : i32, message = "bqk,bkd->bqd"}> : () -> ()
    %cst_14 = arith.constant dense<0.000000e+00> : vector<8x8x8xf32>
    %55 = tpu.matmul %54, %33, %cst_14 {dimension_numbers = #tpu.dot_dimension_numbers<[2], [1], [1], [2], [0, 0, 0, 1, 1, 2], [0], [0]>} : vector<8x8x8xf32>, vector<8x8x8xf32>, vector<8x8x8xf32> -> vector<8x8x8xf32>
    "tpu.trace_stop"() : () -> ()
    %56 = vector.shape_cast %55 : vector<8x8x8xf32> to vector<2x4x8x8xf32>
    %57 = tpu.transpose %56, [0, 2, 1, 3] : vector<2x4x8x8xf32> -> vector<2x8x4x8xf32>
    %58 = vector.shape_cast %57 : vector<2x8x4x8xf32> to vector<16x32xf32>
    %59 = vector.extract_strided_slice %1 {offsets = [0, 96], sizes = [32, 32], strides = [1, 1]} : vector<32x192xf32> to vector<32x32xf32>
    %cst_15 = arith.constant dense<0.000000e+00> : vector<16x32xf32>
    %60 = tpu.matmul %58, %59, %cst_15 {dimension_numbers = #tpu.dot_dimension_numbers<[1], [0], [0], [1], [0, 0, 1, 1], [], []>} : vector<16x32xf32>, vector<32x32xf32>, vector<16x32xf32> -> vector<16x32xf32>
    %61 = vector.broadcast %4 : vector<1x32xf32> to vector<16x32xf32>
    %62 = arith.addf %60, %61 : vector<16x32xf32>
    %63 = arith.addf %0, %62 : vector<16x32xf32>
    %cst_16 = arith.constant dense<0.000000e+00> : vector<16xf32>
    %64 = vector.multi_reduction <add>, %63, %cst_16 [1] : vector<16x32xf32> to vector<16xf32>
    %65 = vector.shape_cast %64 : vector<16xf32> to vector<16x1xf32>
    %cst_17 = arith.constant 3.200000e+01 : f32
    %66 = vector.broadcast %cst_17 : f32 to vector<16x1xf32>
    %67 = arith.divf %65, %66 : vector<16x1xf32>
    %68 = vector.broadcast %67 : vector<16x1xf32> to vector<16x32xf32>
    %69 = arith.subf %63, %68 : vector<16x32xf32>
    %70 = arith.mulf %69, %69 : vector<16x32xf32>
    %cst_18 = arith.constant dense<0.000000e+00> : vector<16xf32>
    %71 = vector.multi_reduction <add>, %70, %cst_18 [1] : vector<16x32xf32> to vector<16xf32>
    %72 = vector.shape_cast %71 : vector<16xf32> to vector<16x1xf32>
    %cst_19 = arith.constant 3.200000e+01 : f32
    %73 = vector.broadcast %cst_19 : f32 to vector<16x1xf32>
    %74 = arith.divf %72, %73 : vector<16x1xf32>
    %cst_20 = arith.constant 9.99999974E-6 : f32
    %75 = vector.broadcast %cst_20 : f32 to vector<16x1xf32>
    %76 = arith.addf %74, %75 : vector<16x1xf32>
    %77 = math.rsqrt %76 : vector<16x1xf32>
    %78 = vector.broadcast %77 : vector<16x1xf32> to vector<16x32xf32>
    %79 = arith.mulf %69, %78 : vector<16x32xf32>
    %80 = vector.extract_strided_slice %1 {offsets = [0, 128], sizes = [32, 64], strides = [1, 1]} : vector<32x192xf32> to vector<32x64xf32>
    %cst_21 = arith.constant dense<0.000000e+00> : vector<16x64xf32>
    %81 = tpu.matmul %79, %80, %cst_21 {dimension_numbers = #tpu.dot_dimension_numbers<[1], [0], [0], [1], [0, 0, 1, 1], [], []>} : vector<16x32xf32>, vector<32x64xf32>, vector<16x64xf32> -> vector<16x64xf32>
    %82 = vector.broadcast %5 : vector<1x64xf32> to vector<16x64xf32>
    %83 = arith.addf %81, %82 : vector<16x64xf32>
    %cst_22 = arith.constant 5.000000e-01 : f32
    %84 = vector.broadcast %cst_22 : f32 to vector<16x64xf32>
    %85 = arith.mulf %84, %83 : vector<16x64xf32>
    %cst_23 = arith.constant 0.707106769 : f32
    %86 = vector.broadcast %cst_23 : f32 to vector<16x64xf32>
    %87 = arith.mulf %83, %86 : vector<16x64xf32>
    %88 = math.erf %87 : vector<16x64xf32>
    %cst_24 = arith.constant 1.000000e+00 : f32
    %89 = vector.broadcast %cst_24 : f32 to vector<16x64xf32>
    %90 = arith.addf %89, %88 : vector<16x64xf32>
    %91 = arith.mulf %85, %90 : vector<16x64xf32>
    %c0_25 = arith.constant 0 : index
    %c0_26 = arith.constant 0 : index
    %92 = vector.load %arg2[%c0_25, %c0_26] : memref<64x32xf32, #tpu.memory_space<vmem>>, vector<64x32xf32>
    %cst_27 = arith.constant dense<0.000000e+00> : vector<16x32xf32>
    %93 = tpu.matmul %91, %92, %cst_27 {dimension_numbers = #tpu.dot_dimension_numbers<[1], [0], [0], [1], [0, 0, 1, 1], [], []>} : vector<16x64xf32>, vector<64x32xf32>, vector<16x32xf32> -> vector<16x32xf32>
    %94 = vector.broadcast %6 : vector<1x32xf32> to vector<16x32xf32>
    %95 = arith.addf %93, %94 : vector<16x32xf32>
    %96 = arith.addf %63, %95 : vector<16x32xf32>
    %c0_28 = arith.constant 0 : index
    %c0_29 = arith.constant 0 : index
    %97 = vector.load %arg4[%c0_28, %c0_29] : memref<16x32xf32, #tpu.memory_space<vmem>>, vector<16x32xf32>
    tpu.vector_store %arg4[%c0_28, %c0_29], %96 {strides = array<i32>} : memref<16x32xf32, #tpu.memory_space<vmem>>, vector<16x32xf32>,
    return
  }
}

</mosaic_0001>

<bundles_post_ra>
// kernel: transformer_encoder_block.1
= control target key start
LH: loop header
LB: loop body
LE: loop exit
PB: predicated region body
PF: predicated region fallthrough
CT: control target
= control target key end

     0   :  { %vm29_vm0 = vcmask 261120   ;;  %s3258_s0 = inlined_call_operand.vmem [shape: f32[16,32], index: 0, kind: input, shape index: {}]   ;;  %s3259_s1 = inlined_call_operand.vmem [shape: f32[32,192], index: 1, kind: input, shape index: {}]   ;;  %s3260_s2 = inlined_call_operand.vmem [shape: f32[64,32], index: 2, kind: input, shape index: {}]   ;;  %s3261_s3 = inlined_call_operand.vmem [shape: f32[6,128], index: 3, kind: input, shape index: {}]   ;;  %s3262_s4 = inlined_call_operand.hbm [shape: f32[16,32], index: 4, kind: output, shape index: {}]  }
   0x1   :  { %v18_v0 = vld [vmem:[%s3258_s0] sm:$0xff]  ;;  %v19_v1 = vld [vmem:[%s3258_s0 + $0x8] sm:$0xff] }
   0x2   :  { %9 = vsyncpa [#allocation3], 0  ;;  %v30_v2 = vsel %vm29_vm0, %v18_v0, 0.0  ;;  %v33_v3 = vsel %vm29_vm0, %v19_v1, 0.0  ;;  %v2871_v14 = vld [vmem:[%s3259_s1] sm:$0xff]  ;;  %v2876_v15 = vld [vmem:[%s3259_s1 + $0x10] sm:$0xff]  ;;  %v57_v31 = vlaneseq }
   0x3   :  { %31 = vadd.xlane.f32.xlu0 %v30_v2  ;;  %v2881_v16 = vld [vmem:[%s3259_s1 + $0x20] sm:$0xff]  ;;  %v2735_v17 = vpack.i.bf16 %v2876_v15, %v2871_v14  ;;  %v2679_v18 = vpack.c.bf16 %v2876_v15, %v2871_v14  ;;  %v2890_v19 = vld [vmem:[%s3259_s1 + $0x30] sm:$0xff]  ;;  %s2817_s29 = smov 80   ;;  %s2818_s30 = smov 104   ;;  %v2820_v40 = vmov 0.0   ;;  %vm2823_vm1 = vmmov 0  }
   0x4   :  { %v2683_v20 = vpack.c.bf16 %v2890_v19, %v2881_v16  ;;  %v2896_v32 = vshrl.u32 %v57_v31, 7  ;;  %v2904_v34 = vld [vmem:[%s3261_s3] sm:$0x3f]  ;;  %s2819_s5 = smov 56   ;;  %2568 = vmatprep.subr.mxu0 %v2820_v40  ;;  %v2821_v41 = vmov 1983009808   ;;  %2570 = vmatprep.mubr.msk.f32.mxu0 %vm2823_vm1, %v2820_v40 }
   0x5   :  { %2680 = vmatprep.subr.bf16.mxu1 %v2679_v18  ;;  %v165_v42 = vunpack.c.l.s4 %v2821_v41  ;;  %v2822_v43 = vmov 1934713408   ;;  %s2824_s6 = smov 120   ;;  %vm471_vm2 = vcmask 64512   ;;  %s2826_s7 = smov 112   ;;  %vm2103_vm3 = vcmask 130048  }
   0x6   :  { %2682 = vmatpush3.bf16.msra.mxu1 %v2679_v18  ;;  %v2899_v33 = vsub.s32 0, %v2896_v32  ;;  %v197_v44 = vunpack.c.l.s4 %v2822_v43  ;;  %s2827_s8 = smov 32   ;;  %s2828_s9 = smov 8   ;;  %vm2106_vm4 = vcmask 195584   ;;  %vm2345_vm5 = vcmask 523264  }
   0x7   :  { %34 = vadd.xlane.f32.xlu0 %v33_v3  ;;  %2684 = vmatprep.subr.bf16.mxu1 %v2683_v20  ;;  %v166_v45 = vunpack.c.0.s8 %v165_v42  ;;  %s2829_s10 = smov 16   ;;  %s2830_s11 = smov 24  }
   0x8   :  { %v60_v35 = vrot.slane %v2904_v34, %v2899_v33  ;;  %v198_v47 = vunpack.c.0.s8 %v197_v44 }
   0x9   :  { %v2911_v48 = vsub.s32 %v166_v45, %v2896_v32 }
   0xa   :  { %2686 = vmatpush3.bf16.msra.mxu1 %v2683_v20  ;;  %v2914_v55 = vsub.s32 %v198_v47, %v2896_v32 }
   0xb   :  { %2558 = vmatprep.subr.mxu1 %v2820_v40 }
  0x90   :  { %v32_v4 = vpop.xlane.xlu0 %31 }
  0x91   :  { %v37_v5 = vmul.f32 0.03125, %v32_v4 }
  0x93   :  { %v39_v6 = vsub.f32 %v18_v0, %v37_v5 }
  0x94   :  { %v35_v7 = vpop.xlane.xlu0 %34 }
  0x95   :  { %v38_v8 = vmul.f32 0.03125, %v35_v7  ;;  %v41_v9 = vmul.f32 %v39_v6, %v39_v6 }
  0x97   :  { %v40_v10 = vsub.f32 %v19_v1, %v38_v8  ;;  %v43_v11 = vsel %vm29_vm0, %v41_v9, 0.0 }
  0x98   :  { %44 = vadd.xlane.f32.xlu1 %v43_v11 }
  0x99   :  { %v42_v12 = vmul.f32 %v40_v10, %v40_v10 }
  0x9b   :  { %v46_v13 = vsel %vm29_vm0, %v42_v12, 0.0 }
  0x9c   :  { %47 = vadd.xlane.f32.xlu1 %v46_v13 }
 0x125   :  { %v45_v21 = vpop.xlane.xlu1 %44 }
 0x126   :  { %v49_v22 = vmul.f32 0.03125, %v45_v21 }
 0x128   :  { %v51_v23 = vadd.f32 1e-05, %v49_v22 }
 0x129   :  { %v48_v24 = vpop.xlane.xlu1 %47 }
 0x12a   :  { %2746 = vrsqrt.f32 %v51_v23  ;;  %v50_v25 = vmul.f32 0.03125, %v48_v24 }
 0x12c   :  { %v52_v26 = vadd.f32 1e-05, %v50_v25 }
 0x12e   :  { %2748 = vrsqrt.f32 %v52_v26 }
 0x134   :  { %v2747_v27 = vpop.eup %2746 }
 0x135   :  { %v55_v28 = vmul.f32 %v2747_v27, %v39_v6 }
 0x137   :  { %2555 = vmatprep.mubr.msk.f32.mxu1 %vm29_vm0, %v55_v28 }
 0x138   :  { %v2749_v29 = vpop.eup %2748 }
 0x139   :  { %v56_v30 = vmul.f32 %v2749_v29, %v40_v10 }
 0x13b   :  { %2556 = vmatmul.mubr.msk.f32.vlgmr.msra.gmra.mrb[0].mxu1 %vm29_vm0, %v56_v30 }
 0x13c   :  { %2560 = vmatprep.mubr.msk.f32.mxu1 %vm2823_vm1, %v2820_v40 }
 0x20e   :  { %v2557_v36 = vpop.f32.mrb[0].mxu1 }
 0x20f   :  { %v133_v37 = vpop.f32.mrb[1].mxu1  ;;  %v139_v39 = vadd.f32 %v2557_v36, %v60_v35 }
 0x210   :  { %v134_v38 = vadd.f32 %v133_v37, %v60_v35 }
 0x212   :  { %150 = vrot.lane.b32.xlu1 %v134_v38, %s2817_s29  ;;  %144 = vrot.lane.b32.xlu0 %v134_v38, %s2818_s30 }
 0x216   :  { %156 = vrot.lane.b32.xlu1 %v134_v38, %s2819_s5  ;;  %152 = vrot.lane.b32.xlu0 %v139_v39, %s2817_s29 }
 0x21a   :  { %146 = vrot.lane.b32.xlu1 %v139_v39, %s2818_s30 }
 0x21e   :  { %158 = vrot.lane.b32.xlu1 %v139_v39, %s2819_s5 }
 0x284   :  { %v151_v46 = vpop.permute.xlu1 %150  ;;  %v145_v51 = vpop.permute.xlu0 %144 }
 0x285   :  { %v162_v49 = vcombine.low %v134_v38, %v151_v46  ;;  %v163_v50 = vcombine.high %v134_v38, %v151_v46 }
 0x287   :  { %v170_v56 = vrot.slane %v162_v49, %v2911_v48  ;;  %v177_v57 = vrot.slane %v163_v50, %v2911_v48 }
 0x288   :  { %v157_v52 = vpop.permute.xlu1 %156  ;;  %v153_v1 = vpop.permute.xlu0 %152 }
 0x289   :  { %v178_v53 = vcombine.low %v145_v51, %v157_v52  ;;  %v179_v54 = vcombine.high %v145_v51, %v157_v52  ;;  %v230_v6 = vcombine.low %v139_v39, %v153_v1  ;;  %v231_v7 = vcombine.high %v139_v39, %v153_v1 }
 0x28b   :  { %v186_v58 = vrot.slane %v178_v53, %v2911_v48  ;;  %v193_v59 = vrot.slane %v179_v54, %v2911_v48  ;;  %v238_v24 = vrot.slane %v230_v6, %v2911_v48  ;;  %v245_v25 = vrot.slane %v231_v7, %v2911_v48 }
 0x28c   :  { %v147_v60 = vpop.permute.xlu1 %146 }
 0x28d   :  { %v194_v61 = vcombine.low %v170_v56, %v186_v58  ;;  %v195_v62 = vcombine.high %v170_v56, %v186_v58  ;;  %v210_v63 = vcombine.low %v177_v57, %v193_v59  ;;  %v211_v0 = vcombine.high %v177_v57, %v193_v59 }
 0x28f   :  { %v202_v2 = vrot.slane %v194_v61, %v2914_v55  ;;  %v209_v3 = vrot.slane %v195_v62, %v2914_v55  ;;  %v218_v4 = vrot.slane %v210_v63, %v2914_v55  ;;  %v225_v5 = vrot.slane %v211_v0, %v2914_v55 }
 0x290   :  { %v159_v8 = vpop.permute.xlu1 %158 }
 0x291   :  { %v298_v9 = vcombine.low %v202_v2, %v209_v3  ;;  %v2449_v10 = vcombine.high %v202_v2, %v209_v3  ;;  %v314_v11 = vcombine.low %v218_v4, %v225_v5  ;;  %v2450_v12 = vcombine.high %v218_v4, %v225_v5 }
 0x292   :  { %v246_v13 = vcombine.low %v147_v60, %v159_v8  ;;  %v247_v18 = vcombine.high %v147_v60, %v159_v8 }
 0x293   :  { %v305_v20 = vrot.slane %v298_v9, %v2911_v48  ;;  %v313_v21 = vrot.slane %v2449_v10, %v2911_v48  ;;  %v321_v22 = vrot.slane %v314_v11, %v2911_v48  ;;  %v329_v23 = vrot.slane %v2450_v12, %v2911_v48 }
 0x294   :  { %v254_v26 = vrot.slane %v246_v13, %v2911_v48  ;;  %v261_v27 = vrot.slane %v247_v18, %v2911_v48 }
 0x295   :  { %v330_v28 = vcombine.low %v305_v20, %v313_v21  ;;  %v346_v29 = vcombine.low %v321_v22, %v329_v23  ;;  %v331_v30 = vcombine.high %v305_v20, %v313_v21  ;;  %v347_v31 = vcombine.high %v321_v22, %v329_v23 }
 0x296   :  { %v262_v35 = vcombine.low %v238_v24, %v254_v26  ;;  %v263_v36 = vcombine.high %v238_v24, %v254_v26  ;;  %v278_v37 = vcombine.low %v245_v25, %v261_v27  ;;  %v279_v38 = vcombine.high %v245_v25, %v261_v27 }
 0x297   :  { %v338_v39 = vrot.slane %v330_v28, %v2914_v55  ;;  %v354_v41 = vrot.slane %v346_v29, %v2914_v55  ;;  %v345_v49 = vrot.slane %v331_v30, %v2914_v55  ;;  %v361_v50 = vrot.slane %v347_v31, %v2914_v55 }
 0x298   :  { %v270_v42 = vrot.slane %v262_v35, %v2914_v55  ;;  %v277_v43 = vrot.slane %v263_v36, %v2914_v55  ;;  %v286_v44 = vrot.slane %v278_v37, %v2914_v55  ;;  %v293_v45 = vrot.slane %v279_v38, %v2914_v55 }
 0x299   :  { %v2942_v46 = vcombine.high %v338_v39, %v354_v41  ;;  %v2944_v47 = vcombine.low %v338_v39, %v354_v41  ;;  %v2954_v60 = vcombine.high %v345_v49, %v361_v50  ;;  %v2956_v61 = vcombine.low %v345_v49, %v361_v50 }
 0x29a   :  { %v366_v51 = vcombine.low %v270_v42, %v277_v43  ;;  %v2451_v52 = vcombine.high %v270_v42, %v277_v43  ;;  %v382_v53 = vcombine.low %v286_v44, %v293_v45  ;;  %v2452_v54 = vcombine.high %v286_v44, %v293_v45 }
 0x29b   :  { %547 = vrot.lane.b32.xlu1 %v2942_v46, %s2824_s6  ;;  %469 = vrot.lane.b32.xlu0 %v2944_v47, %s2824_s6  ;;  %v2825_v23 = vmov 1966171168   ;;  %v435_v26 = vcombine.high %v2904_v34, %v2904_v34 }
 0x29c   :  { %v373_v56 = vrot.slane %v366_v51, %v2911_v48  ;;  %v381_v57 = vrot.slane %v2451_v52, %v2911_v48  ;;  %v389_v58 = vrot.slane %v382_v53, %v2911_v48  ;;  %v397_v59 = vrot.slane %v2452_v54, %v2911_v48 }
 0x29d   :  { %v437_v24 = vunpack.c.l.s4 %v2825_v23 }
 0x29e   :  { %v398_v62 = vcombine.low %v373_v56, %v381_v57  ;;  %v414_v63 = vcombine.low %v389_v58, %v397_v59  ;;  %v399_v0 = vcombine.high %v373_v56, %v381_v57  ;;  %v415_v1 = vcombine.high %v389_v58, %v397_v59 }
 0x29f   :  { %701 = vrot.lane.b32.xlu1 %v2954_v60, %s2824_s6  ;;  %624 = vrot.lane.b32.xlu0 %v2956_v61, %s2824_s6  ;;  %v438_v25 = vunpack.c.0.s8 %v437_v24 }
 0x2a0   :  { %v406_v2 = vrot.slane %v398_v62, %v2914_v55  ;;  %v422_v3 = vrot.slane %v414_v63, %v2914_v55  ;;  %v413_v6 = vrot.slane %v399_v0, %v2914_v55  ;;  %v429_v7 = vrot.slane %v415_v1, %v2914_v55 }
 0x2a1   :  { %v441_v27 = vsub.s32 %v438_v25, %v2896_v32 }
 0x2a2   :  { %v2962_v4 = vcombine.high %v406_v2, %v422_v3  ;;  %v2964_v5 = vcombine.low %v406_v2, %v422_v3  ;;  %v2970_v8 = vcombine.high %v413_v6, %v429_v7  ;;  %v2972_v9 = vcombine.low %v413_v6, %v429_v7 }
 0x2a3   :  { %v442_v28 = vrot.slane %v435_v26, %v441_v27 }
 0x2a4   :  { %855 = vrot.lane.b32.xlu1 %v2962_v4, %s2824_s6  ;;  %778 = vrot.lane.b32.xlu0 %v2964_v5, %s2824_s6 }
 0x2a5   :  { %v450_v29 = vrot.slane %v442_v28, %v441_v27  ;;  %v443_v31 = vcombine.high %v442_v28, %v442_v28 }
 0x2a7   :  { %v461_v30 = vrot.slane %v450_v29, %v2899_v33  ;;  %v457_v39 = vrot.slane %v443_v31, %v441_v27 }
 0x2a8   :  { %1009 = vrot.lane.b32.xlu1 %v2970_v8, %s2824_s6  ;;  %932 = vrot.lane.b32.xlu0 %v2972_v9, %s2824_s6 }
 0x2a9   :  { %v465_v52 = vrot.slane %v457_v39, %v2899_v33 }
 0x30d   :  { %v548_v10 = vpop.permute.xlu1 %547  ;;  %v470_v11 = vpop.permute.xlu0 %469 }
 0x30e   :  { %2559 = vmatpush3.xpose.msk.msra.mxu1 %vm471_vm2, %v470_v11 }
 0x30f   :  { %2563 = vmatprep.subr.mxu1 %v2820_v40 }
 0x311   :  { %v702_v12 = vpop.permute.xlu1 %701  ;;  %2561 = vmatmul.mubr.msk.f32.vlgmr.msra.gmra.mrb[2].mxu1 %vm471_vm2, %v2944_v47  ;;  %v625_v13 = vpop.permute.xlu0 %624 }
 0x312   :  { %2564 = vmatpush3.xpose.msk.msra.mxu1 %vm471_vm2, %v548_v10  ;;  %2569 = vmatpush3.xpose.msk.msra.mxu0 %vm471_vm2, %v625_v13 }
 0x313   :  { %2565 = vmatprep.mubr.msk.f32.mxu1 %vm2823_vm1, %v2820_v40  ;;  %2573 = vmatprep.subr.mxu1 %v2820_v40 }
 0x314   :  { %2578 = vmatprep.subr.mxu0 %v2820_v40 }
 0x315   :  { %2566 = vmatmul.mubr.msk.f32.vlgmr.msra.gmra.mrb[4].mxu1 %vm471_vm2, %v2942_v46  ;;  %2571 = vmatmul.mubr.msk.f32.vlgmr.msra.gmra.mrb[0].mxu0 %vm471_vm2, %v2956_v61 }
 0x316   :  { %v779_v18 = vpop.permute.xlu0 %778  ;;  %2574 = vmatpush3.xpose.msk.msra.mxu1 %vm471_vm2, %v702_v12  ;;  %2575 = vmatprep.mubr.msk.f32.mxu1 %vm2823_vm1, %v2820_v40  ;;  %v856_v20 = vpop.permute.xlu1 %855 }
 0x317   :  { %2579 = vmatpush3.xpose.msk.msra.mxu0 %vm471_vm2, %v779_v18  ;;  %2580 = vmatprep.mubr.msk.f32.mxu0 %vm2823_vm1, %v2820_v40 }
 0x318   :  { %2583 = vmatprep.subr.mxu1 %v2820_v40  ;;  %2588 = vmatprep.subr.mxu0 %v2820_v40 }
 0x319   :  { %2576 = vmatmul.mubr.msk.f32.vlgmr.msra.gmra.mrb[6].mxu1 %vm471_vm2, %v2954_v60 }
 0x31a   :  { %2581 = vmatmul.mubr.msk.f32.vlgmr.msra.gmra.mrb[2].mxu0 %vm471_vm2, %v2964_v5  ;;  %v933_v21 = vpop.permute.xlu0 %932  ;;  %2584 = vmatpush3.xpose.msk.msra.mxu1 %vm471_vm2, %v856_v20  ;;  %v1010_v22 = vpop.permute.xlu1 %1009 }
 0x31b   :  { %2589 = vmatpush3.xpose.msk.msra.mxu0 %vm471_vm2, %v933_v21  ;;  %2585 = vmatprep.mubr.msk.f32.mxu1 %vm2823_vm1, %v2820_v40 }
 0x31c   :  { %2590 = vmatprep.mubr.msk.f32.mxu0 %vm2823_vm1, %v2820_v40  ;;  %2593 = vmatprep.subr.mxu1 %v2820_v40 }
 0x31d   :  { %2586 = vmatmul.mubr.msk.f32.vlgmr.msra.gmra.mrb[8].mxu1 %vm471_vm2, %v2962_v4  ;;  %2598 = vmatprep.subr.mxu0 %v2820_v40 }
 0x31e   :  { %2591 = vmatmul.mubr.msk.f32.vlgmr.msra.gmra.mrb[4].mxu0 %vm471_vm2, %v2972_v9  ;;  %2594 = vmatpush3.xpose.msk.msra.mxu1 %vm471_vm2, %v1010_v22 }
 0x31f   :  { %2595 = vmatprep.mubr.msk.f32.mxu1 %vm2823_vm1, %v2820_v40  ;;  %2603 = vmatprep.subr.mxu1 %v2820_v40 }
 0x320   :  { %2600 = vmatprep.mubr.msk.f32.mxu0 %vm2823_vm1, %v2820_v40 }
 0x321   :  { %2596 = vmatmul.mubr.msk.f32.vlgmr.msra.gmra.mrb[10].mxu1 %vm471_vm2, %v2970_v8 }
 0x322   :  { %2605 = vmatprep.mubr.msk.f32.mxu1 %vm2823_vm1, %v2820_v40 }
 0x3e4   :  { %v542_v35 = vpop.f32.mrb[2].mxu1 }
 0x3e5   :  { %v543_v36 = vadd.f32 %v542_v35, %v461_v30  ;;  %v2562_v37 = vpop.f32.mrb[3].mxu1 }
 0x3e7   :  { %v1085_v38 = vsel %vm471_vm2, %v543_v36, -inf }
 0x3e8   :  { %1086 = vmax.xlane.f32.xlu0 %v1085_v38  ;;  %v619_v41 = vpop.f32.mrb[4].mxu1  ;;  %v696_v42 = vpop.f32.mrb[0].mxu0 }
 0x3e9   :  { %v620_v43 = vadd.f32 %v619_v41, %v461_v30  ;;  %v697_v44 = vadd.f32 %v696_v42, %v461_v30  ;;  %v2567_v45 = vpop.f32.mrb[5].mxu1  ;;  %v2572_v49 = vpop.f32.mrb[1].mxu0 }
 0x3eb   :  { %v1088_v50 = vsel %vm471_vm2, %v620_v43, -inf  ;;  %v1091_v51 = vsel %vm471_vm2, %v697_v44, -inf }
 0x3ec   :  { %1089 = vmax.xlane.f32.xlu1 %v1088_v50  ;;  %v773_v53 = vpop.f32.mrb[6].mxu1  ;;  %1092 = vmax.xlane.f32.xlu0 %v1091_v51 }
 0x3ed   :  { %v774_v54 = vadd.f32 %v773_v53, %v461_v30  ;;  %v850_v56 = vpop.f32.mrb[2].mxu0  ;;  %v2577_v57 = vpop.f32.mrb[7].mxu1 }
 0x3ee   :  { %v2582_v58 = vpop.f32.mrb[3].mxu0  ;;  %v851_v59 = vadd.f32 %v850_v56, %v465_v52 }
 0x3ef   :  { %v1094_v62 = vsel %vm471_vm2, %v774_v54, -inf }
 0x3f0   :  { %v927_v63 = vpop.f32.mrb[8].mxu1  ;;  %1095 = vmax.xlane.f32.xlu0 %v1094_v62  ;;  %v1097_v6 = vsel %vm471_vm2, %v851_v59, -inf }
 0x3f1   :  { %v1004_v0 = vpop.f32.mrb[4].mxu0  ;;  %v2587_v1 = vpop.f32.mrb[9].mxu1  ;;  %v928_v11 = vadd.f32 %v927_v63, %v465_v52 }
 0x3f2   :  { %v2592_v2 = vpop.f32.mrb[5].mxu0  ;;  %v1005_v3 = vadd.f32 %v1004_v0, %v465_v52 }
 0x3f3   :  { %v1100_v13 = vsel %vm471_vm2, %v928_v11, -inf }
 0x3f4   :  { %v1081_v7 = vpop.f32.mrb[10].mxu1  ;;  %1098 = vmax.xlane.f32.xlu0 %v1097_v6  ;;  %v1103_v10 = vsel %vm471_vm2, %v1005_v3, -inf }
 0x3f5   :  { %v2597_v33 = vpop.f32.mrb[11].mxu1  ;;  %v3041_v12 = vadd.f32 %v1081_v7, %v465_v52 }
 0x3f7   :  { %v1106_v18 = vsel %vm471_vm2, %v3041_v12, -inf }
 0x3f8   :  { %1104 = vmax.xlane.f32.xlu0 %v1103_v10 }
 0x3fd   :  { %1273 = vrot.lane.b32.xlu1 %v2942_v46, %s2826_s7 }
 0x401   :  { %1349 = vrot.lane.b32.xlu1 %v2956_v61, %s2826_s7 }
 0x40e   :  { %1197 = vrot.lane.b32.xlu0 %v2944_v47, %s2826_s7 }
 0x425   :  { %1101 = vmax.xlane.f32.xlu1 %v1100_v13 }
 0x429   :  { %1107 = vmax.xlane.f32.xlu1 %v1106_v18 }
 0x43a   :  { %1425 = vrot.lane.b32.xlu1 %v2954_v60, %s2826_s7 }
 0x475   :  { %v1087_v46 = vpop.xlane.xlu0 %1086 }
 0x476   :  { %v1109_v20 = vsub.f32 %v543_v36, %v1087_v46 }
 0x478   :  { %v1117_v21 = vmul.f32 1.442695, %v1109_v20 }
 0x479   :  { %v1090_v61 = vpop.xlane.xlu1 %1089  ;;  %v1093_v22 = vpop.xlane.xlu0 %1092 }
 0x47a   :  { %2750 = vpow2.f32 %v1117_v21  ;;  %v1110_v47 = vsub.f32 %v620_v43, %v1090_v61  ;;  %v1111_v23 = vsub.f32 %v697_v44, %v1093_v22 }
 0x47c   :  { %v1119_v24 = vmul.f32 1.442695, %v1110_v47  ;;  %v1121_v25 = vmul.f32 1.442695, %v1111_v23 }
 0x47d   :  { %v1274_v26 = vpop.permute.xlu1 %1273  ;;  %v1096_v27 = vpop.xlane.xlu0 %1095 }
 0x47e   :  { %2752 = vpow2.f32 %v1119_v24  ;;  %v1112_v28 = vsub.f32 %v774_v54, %v1096_v27  ;;  %2604 = vmatpush3.msra.mxu1 %v1274_v26 }
 0x47f   :  { %2754 = vpow2.f32 %v1121_v25  ;;  %2613 = vmatprep.subr.mxu1 %v2820_v40 }
 0x480   :  { %v1123_v29 = vmul.f32 1.442695, %v1112_v28 }
 0x481   :  { %v1099_v60 = vpop.xlane.xlu0 %1098  ;;  %v1350_v56 = vpop.permute.xlu1 %1349 }
 0x482   :  { %2756 = vpow2.f32 %v1123_v29  ;;  %v1113_v30 = vsub.f32 %v851_v59, %v1099_v60 }
 0x484   :  { %v3049_v31 = vpop.eup %2750  ;;  %v1125_v35 = vmul.f32 1.442695, %v1113_v30 }
 0x485   :  { %v1105_v36 = vpop.xlane.xlu0 %1104  ;;  %v1133_v37 = vsel %vm471_vm2, %v3049_v31, 0.0 }
 0x486   :  { %2758 = vpow2.f32 %v1125_v35  ;;  %v1115_v38 = vsub.f32 %v1005_v3, %v1105_v36  ;;  %1134 = vadd.xlane.f32.xlu0 %v1133_v37 }
 0x488   :  { %v3053_v39 = vpop.eup %2752  ;;  %v1129_v41 = vmul.f32 1.442695, %v1115_v38 }
 0x489   :  { %v3055_v42 = vpop.eup %2754  ;;  %v1198_v43 = vpop.permute.xlu0 %1197  ;;  %v1136_v44 = vsel %vm471_vm2, %v3053_v39, 0.0 }
 0x48a   :  { %2760 = vpow2.f32 %v1129_v41  ;;  %1137 = vadd.xlane.f32.xlu1 %v1136_v44  ;;  %v1139_v45 = vsel %vm471_vm2, %v3055_v42, 0.0  ;;  %2599 = vmatpush3.msra.mxu0 %v1198_v43 }
 0x48b   :  { %1140 = vadd.xlane.f32.xlu0 %v1139_v45  ;;  %2608 = vmatprep.subr.mxu0 %v2820_v40 }
 0x48c   :  { %v3062_v49 = vpop.eup %2756 }
 0x48d   :  { %v1142_v50 = vsel %vm471_vm2, %v3062_v49, 0.0 }
 0x48e   :  { %1143 = vadd.xlane.f32.xlu1 %v1142_v50 }
 0x490   :  { %v3066_v51 = vpop.eup %2758 }
 0x491   :  { %v1145_v52 = vsel %vm471_vm2, %v3066_v51, 0.0 }
 0x492   :  { %1146 = vadd.xlane.f32.xlu0 %v1145_v52 }
 0x494   :  { %v3070_v53 = vpop.eup %2760 }
 0x495   :  { %v1151_v54 = vsel %vm471_vm2, %v3070_v53, 0.0 }
 0x496   :  { %1152 = vadd.xlane.f32.xlu0 %v1151_v54 }
 0x49f   :  { %1577 = vrot.lane.b32.xlu1 %v2962_v4, %s2826_s7 }
 0x4ac   :  { %1501 = vrot.lane.b32.xlu0 %v2964_v5, %s2826_s7 }
 0x4b0   :  { %1653 = vrot.lane.b32.xlu0 %v2972_v9, %s2826_s7 }
 0x4b2   :  { %v1102_v57 = vpop.xlane.xlu1 %1101 }
 0x4b3   :  { %v1114_v58 = vsub.f32 %v928_v11, %v1102_v57 }
 0x4b4   :  { %2736 = vrot.lane.b32.xlu0 %v2735_v17, %s2827_s8 }
 0x4b5   :  { %v1127_v59 = vmul.f32 1.442695, %v1114_v58 }
 0x4b6   :  { %v1108_v62 = vpop.xlane.xlu1 %1107 }
 0x4b7   :  { %2762 = vpow2.f32 %v1127_v59  ;;  %v1116_v63 = vsub.f32 %v3041_v12, %v1108_v62 }
 0x4b9   :  { %v1131_v0 = vmul.f32 1.442695, %v1116_v63 }
 0x4ba   :  { %v1426_v2 = vpop.permute.xlu1 %1425 }
 0x4bb   :  { %2764 = vpow2.f32 %v1131_v0 }
 0x4c1   :  { %v3081_v1 = vpop.eup %2762 }
 0x4c2   :  { %v1148_v4 = vsel %vm471_vm2, %v3081_v1, 0.0 }
 0x4c3   :  { %1149 = vadd.xlane.f32.xlu1 %v1148_v4 }
 0x4c5   :  { %v3085_v5 = vpop.eup %2764 }
 0x4c6   :  { %v1154_v9 = vsel %vm471_vm2, %v3085_v5, 0.0 }
 0x4c7   :  { %1155 = vadd.xlane.f32.xlu1 %v1154_v9 }
 0x4d8   :  { %1729 = vrot.lane.b32.xlu1 %v2970_v8, %s2826_s7 }
 0x513   :  { %v1135_v3 = vpop.xlane.xlu0 %1134 }
 0x514   :  { %2766 = vrcp.f32 %v1135_v3 }
 0x517   :  { %v1138_v6 = vpop.xlane.xlu1 %1137 }
 0x518   :  { %2768 = vrcp.f32 %v1138_v6  ;;  %v1141_v7 = vpop.xlane.xlu0 %1140 }
 0x519   :  { %2770 = vrcp.f32 %v1141_v7 }
 0x51b   :  { %v1144_v33 = vpop.xlane.xlu1 %1143 }
 0x51c   :  { %2772 = vrcp.f32 %v1144_v33 }
 0x51e   :  { %v2767_v10 = vpop.eup %2766 }
 0x51f   :  { %v1165_v11 = vmul.f32 %v2767_v10, %v1135_v3  ;;  %v1147_v12 = vpop.xlane.xlu0 %1146  ;;  %v1578_v41 = vpop.permute.xlu1 %1577 }
 0x520   :  { %2774 = vrcp.f32 %v1147_v12 }
 0x521   :  { %v1173_v13 = vsub.f32 2.0, %v1165_v11 }
 0x522   :  { %v2769_v18 = vpop.eup %2768 }
 0x523   :  { %v2771_v46 = vpop.eup %2770  ;;  %v1181_v20 = vmul.f32 %v2767_v10, %v1173_v13  ;;  %v1166_v21 = vmul.f32 %v2769_v18, %v1138_v6  ;;  %v1153_v61 = vpop.xlane.xlu0 %1152 }
 0x524   :  { %v1167_v8 = vmul.f32 %v2771_v46, %v1141_v7  ;;  %2776 = vrcp.f32 %v1153_v61 }
 0x525   :  { %v1189_v22 = vmul.f32 %v3049_v31, %v1181_v20  ;;  %v1174_v47 = vsub.f32 2.0, %v1166_v21 }
 0x526   :  { %v2773_v23 = vpop.eup %2772  ;;  %v1175_v24 = vsub.f32 2.0, %v1167_v8 }
 0x527   :  { %v1182_v25 = vmul.f32 %v2769_v18, %v1174_v47  ;;  %v1168_v26 = vmul.f32 %v2773_v23, %v1144_v33  ;;  %2601 = vmatmul.mubr.msk.f32.vlgmr.msra.gmra.mrb[6].mxu0 %vm471_vm2, %v1189_v22  ;;  %v1502_v36 = vpop.permute.xlu0 %1501 }
 0x528   :  { %v1183_v27 = vmul.f32 %v2771_v46, %v1175_v24  ;;  %2609 = vmatpush3.msra.mxu0 %v1350_v56  ;;  %2610 = vmatprep.mubr.msk.f32.mxu0 %vm2823_vm1, %v2820_v40 }
 0x529   :  { %v1190_v28 = vmul.f32 %v3053_v39, %v1182_v25  ;;  %v1176_v29 = vsub.f32 2.0, %v1168_v26  ;;  %2618 = vmatprep.subr.mxu0 %v2820_v40 }
 0x52a   :  { %v2775_v60 = vpop.eup %2774  ;;  %v1191_v30 = vmul.f32 %v3055_v42, %v1183_v27 }
 0x52b   :  { %v1184_v31 = vmul.f32 %v2773_v23, %v1176_v29  ;;  %v1169_v35 = vmul.f32 %v2775_v60, %v1147_v12  ;;  %2606 = vmatmul.mubr.msk.f32.vlgmr.msra.gmra.mrb[12].mxu1 %vm471_vm2, %v1190_v28  ;;  %v1654_v50 = vpop.permute.xlu0 %1653 }
 0x52c   :  { %2611 = vmatmul.mubr.msk.f32.vlgmr.msra.gmra.mrb[8].mxu0 %vm471_vm2, %v1191_v30  ;;  %2614 = vmatpush3.msra.mxu1 %v1426_v2 }
 0x52d   :  { %v1192_v37 = vmul.f32 %v3062_v49, %v1184_v31  ;;  %v1177_v38 = vsub.f32 2.0, %v1169_v35  ;;  %2619 = vmatpush3.msra.mxu0 %v1502_v36  ;;  %2615 = vmatprep.mubr.msk.f32.mxu1 %vm2823_vm1, %v2820_v40 }
 0x52e   :  { %v2777_v39 = vpop.eup %2776  ;;  %2623 = vmatprep.subr.mxu1 %v2820_v40  ;;  %2620 = vmatprep.mubr.msk.f32.mxu0 %vm2823_vm1, %v2820_v40 }
 0x52f   :  { %v1185_v42 = vmul.f32 %v2775_v60, %v1177_v38  ;;  %v1171_v43 = vmul.f32 %v2777_v39, %v1153_v61  ;;  %2616 = vmatmul.mubr.msk.f32.vlgmr.msra.gmra.mrb[14].mxu1 %vm471_vm2, %v1192_v37  ;;  %2628 = vmatprep.subr.mxu0 %v2820_v40 }
 0x530   :  { %2624 = vmatpush3.msra.mxu1 %v1578_v41  ;;  %2625 = vmatprep.mubr.msk.f32.mxu1 %vm2823_vm1, %v2820_v40 }
 0x531   :  { %v1193_v44 = vmul.f32 %v3066_v51, %v1185_v42  ;;  %v1179_v45 = vsub.f32 2.0, %v1171_v43  ;;  %2633 = vmatprep.subr.mxu1 %v2820_v40 }
 0x533   :  { %v1187_v49 = vmul.f32 %v2777_v39, %v1179_v45  ;;  %2621 = vmatmul.mubr.msk.f32.vlgmr.msra.gmra.mrb[10].mxu0 %vm471_vm2, %v1193_v44 }
 0x534   :  { %2629 = vmatpush3.msra.mxu0 %v1654_v50  ;;  %2630 = vmatprep.mubr.msk.f32.mxu0 %vm2823_vm1, %v2820_v40 }
 0x535   :  { %v1195_v52 = vmul.f32 %v3070_v53, %v1187_v49 }
 0x537   :  { %2631 = vmatmul.mubr.msk.f32.vlgmr.msra.gmra.mrb[12].mxu0 %vm471_vm2, %v1195_v52 }
 0x550   :  { %v1150_v54 = vpop.xlane.xlu1 %1149 }
 0x551   :  { %2778 = vrcp.f32 %v1150_v54 }
 0x554   :  { %v1156_v56 = vpop.xlane.xlu1 %1155 }
 0x555   :  { %2780 = vrcp.f32 %v1156_v56 }
 0x558   :  { %v1730_v2 = vpop.permute.xlu1 %1729 }
 0x55b   :  { %v2779_v51 = vpop.eup %2778 }
 0x55c   :  { %v1170_v57 = vmul.f32 %v2779_v51, %v1150_v54 }
 0x55e   :  { %v1178_v58 = vsub.f32 2.0, %v1170_v57 }
 0x55f   :  { %v2781_v59 = vpop.eup %2780 }
 0x560   :  { %v1186_v62 = vmul.f32 %v2779_v51, %v1178_v58  ;;  %v1172_v63 = vmul.f32 %v2781_v59, %v1156_v56 }
 0x562   :  { %v1194_v0 = vmul.f32 %v3081_v1, %v1186_v62  ;;  %v1180_v4 = vsub.f32 2.0, %v1172_v63  ;;  %v2740_v1 = vpack.i.bf16 %v2890_v19, %v2881_v16 }
 0x564   :  { %v1188_v9 = vmul.f32 %v2781_v59, %v1180_v4  ;;  %2626 = vmatmul.mubr.msk.f32.vlgmr.msra.gmra.mrb[16].mxu1 %vm471_vm2, %v1194_v0  ;;  %2741 = vrot.lane.b32.xlu1 %v2740_v1, %s2827_s8 }
 0x565   :  { %2634 = vmatpush3.msra.mxu1 %v1730_v2  ;;  %2635 = vmatprep.mubr.msk.f32.mxu1 %vm2823_vm1, %v2820_v40 }
 0x566   :  { %v1196_v53 = vmul.f32 %v3085_v5, %v1188_v9  ;;  %v2737_v5 = vpop.permute.xlu0 %2736 }
 0x567   :  { %v2739_v18 = vunpack.i.h.bf16 %v2737_v5  ;;  %v2738_v46 = vunpack.i.l.bf16 %v2737_v5 }
 0x568   :  { %2636 = vmatmul.mubr.msk.f32.vlgmr.msra.gmra.mrb[18].mxu1 %vm471_vm2, %v1196_v53 }
 0x569   :  { %v2687_v15 = vpack.c.bf16 %v2739_v18, %v2738_v46 }
 0x56b   :  { %2688 = vmatprep.subr.bf16.mxu0 %v2687_v15 }
 0x56c   :  { %2690 = vmatpush3.bf16.msra.mxu0 %v2687_v15 }
 0x5d6   :  { %v2742_v9 = vpop.permute.xlu1 %2741 }
 0x5d7   :  { %v2744_v2 = vunpack.i.h.bf16 %v2742_v9  ;;  %v2743_v53 = vunpack.i.l.bf16 %v2742_v9 }
 0x5fa   :  { %v1269_v3 = vpop.f32.mrb[6].mxu0 }
 0x5fb   :  { %v2602_v6 = vpop.f32.mrb[7].mxu0 }
 0x5fe   :  { %v1345_v7 = vpop.f32.mrb[12].mxu1 }
 0x5ff   :  { %v1421_v33 = vpop.f32.mrb[8].mxu0  ;;  %v2607_v10 = vpop.f32.mrb[13].mxu1 }
 0x600   :  { %v1805_v11 = vcombine.low %v1269_v3, %v1421_v33  ;;  %v1806_v40 = vcombine.high %v1269_v3, %v1421_v33  ;;  %v2612_v12 = vpop.f32.mrb[9].mxu0  ;;  %v2691_v3 = vpack.c.bf16 %v2744_v2, %v2743_v53 }
 0x602   :  { %v1497_v13 = vpop.f32.mrb[14].mxu1  ;;  %v1813_v17 = vrot.slane %v1805_v11, %v2911_v48  ;;  %v1820_v16 = vrot.slane %v1806_v40, %v2911_v48  ;;  %2692 = vmatprep.subr.bf16.mxu0 %v2691_v3 }
 0x603   :  { %v1821_v20 = vcombine.low %v1345_v7, %v1497_v13  ;;  %v1822_v21 = vcombine.high %v1345_v7, %v1497_v13  ;;  %v2617_v14 = vpop.f32.mrb[15].mxu1  ;;  %2694 = vmatpush3.bf16.msra.mxu0 %v2691_v3 }
 0x605   :  { %v1829_v19 = vrot.slane %v1821_v20, %v2911_v48  ;;  %v1836_v61 = vrot.slane %v1822_v21, %v2911_v48 }
 0x606   :  { %v1573_v8 = vpop.f32.mrb[10].mxu0 }
 0x607   :  { %v1837_v22 = vcombine.low %v1813_v17, %v1829_v19  ;;  %v1838_v47 = vcombine.high %v1813_v17, %v1829_v19  ;;  %v1853_v23 = vcombine.low %v1820_v16, %v1836_v61  ;;  %v1854_v24 = vcombine.high %v1820_v16, %v1836_v61  ;;  %v2622_v25 = vpop.f32.mrb[11].mxu0 }
 0x609   :  { %v1845_v26 = vrot.slane %v1837_v22, %v2914_v55  ;;  %v1852_v27 = vrot.slane %v1838_v47, %v2914_v55  ;;  %v1861_v28 = vrot.slane %v1853_v23, %v2914_v55  ;;  %v1868_v29 = vrot.slane %v1854_v24, %v2914_v55 }
 0x60a   :  { %v1725_v60 = vpop.f32.mrb[12].mxu0 }
 0x60b   :  { %v1941_v30 = vcombine.low %v1845_v26, %v1852_v27  ;;  %v2477_v31 = vcombine.high %v1845_v26, %v1852_v27  ;;  %v1957_v35 = vcombine.low %v1861_v28, %v1868_v29  ;;  %v2478_v36 = vcombine.high %v1861_v28, %v1868_v29  ;;  %v2632_v37 = vpop.f32.mrb[13].mxu0 }
 0x60c   :  { %v1873_v38 = vcombine.low %v1573_v8, %v1725_v60  ;;  %v1874_v39 = vcombine.high %v1573_v8, %v1725_v60 }
 0x60d   :  { %v1948_v41 = vrot.slane %v1941_v30, %v2911_v48  ;;  %v1956_v42 = vrot.slane %v2477_v31, %v2911_v48  ;;  %v1964_v43 = vrot.slane %v1957_v35, %v2911_v48  ;;  %v1972_v44 = vrot.slane %v2478_v36, %v2911_v48 }
 0x60e   :  { %v1881_v10 = vrot.slane %v1873_v38, %v2911_v48  ;;  %v1888_v11 = vrot.slane %v1874_v39, %v2911_v48 }
 0x60f   :  { %v1973_v45 = vcombine.low %v1948_v41, %v1956_v42  ;;  %v1989_v49 = vcombine.low %v1964_v43, %v1972_v44  ;;  %v1974_v50 = vcombine.high %v1948_v41, %v1956_v42  ;;  %v1990_v52 = vcombine.high %v1964_v43, %v1972_v44 }
 0x611   :  { %v3141_v54 = vrot.slane %v1973_v45, %v2914_v55  ;;  %v3144_v56 = vrot.slane %v1989_v49, %v2914_v55  ;;  %v1988_v51 = vrot.slane %v1974_v50, %v2914_v55  ;;  %v2004_v57 = vrot.slane %v1990_v52, %v2914_v55 }
 0x613   :  { %v2006_v58 = vcombine.high %v3141_v54, %v3144_v56  ;;  %v2007_v59 = vcombine.low %v1988_v51, %v2004_v57  ;;  %v2008_v62 = vcombine.high %v1988_v51, %v2004_v57  ;;  %v2005_v63 = vcombine.low %v3141_v54, %v3144_v56 }
 0x614   :  { %v2111_v54 = vsub.s32 1, %v2896_v32 }
 0x615   :  { %2079 = vrot.lane.b32.xlu0 %v2006_v58, %s2828_s9 }
 0x616   :  { %v2112_v56 = vrot.slane %v2904_v34, %v2111_v54 }
 0x619   :  { %2087 = vrot.lane.b32.xlu0 %v2007_v59, %s2829_s10 }
 0x61d   :  { %2095 = vrot.lane.b32.xlu0 %v2008_v62, %s2830_s11  ;;  %v2790_v62 = vld [vmem:[%s3258_s0 + $0x8] sm:$0xff] }
 0x637   :  { %v1649_v0 = vpop.f32.mrb[16].mxu1 }
 0x638   :  { %v2627_v4 = vpop.f32.mrb[17].mxu1 }
 0x63b   :  { %v1801_v1 = vpop.f32.mrb[18].mxu1 }
 0x63c   :  { %v1889_v6 = vcombine.low %v1649_v0, %v1801_v1  ;;  %v1890_v7 = vcombine.high %v1649_v0, %v1801_v1  ;;  %v2637_v33 = vpop.f32.mrb[19].mxu1  ;;  %v2791_v0 = vld [vmem:[%s3258_s0] sm:$0xff] }
 0x63e   :  { %v1897_v40 = vrot.slane %v1889_v6, %v2911_v48  ;;  %v1904_v12 = vrot.slane %v1890_v7, %v2911_v48 }
 0x640   :  { %v1905_v5 = vcombine.low %v1881_v10, %v1897_v40  ;;  %v1906_v13 = vcombine.high %v1881_v10, %v1897_v40  ;;  %v1921_v18 = vcombine.low %v1888_v11, %v1904_v12  ;;  %v1922_v46 = vcombine.high %v1888_v11, %v1904_v12  ;;  %v21_v12 = vld [vmem:[%s3259_s1 + $0x8] sm:$0xff] }
 0x642   :  { %v1913_v20 = vrot.slane %v1905_v5, %v2914_v55  ;;  %v1920_v21 = vrot.slane %v1906_v13, %v2914_v55  ;;  %v1929_v14 = vrot.slane %v1921_v18, %v2914_v55  ;;  %v1936_v15 = vrot.slane %v1922_v46, %v2914_v55  ;;  %v23_v5 = vld [vmem:[%s3259_s1 + $0x18] sm:$0xff]  ;;  %v25_v18 = vld [vmem:[%s3259_s1 + $0x28] sm:$0xff] }
 0x643   :  { %v2695_v13 = vpack.c.bf16 %v23_v5, %v21_v12  ;;  %v27_v46 = vld [vmem:[%s3259_s1 + $0x38] sm:$0xff] }
 0x644   :  { %v2009_v17 = vcombine.low %v1913_v20, %v1920_v21  ;;  %v2479_v16 = vcombine.high %v1913_v20, %v1920_v21  ;;  %v2025_v19 = vcombine.low %v1929_v14, %v1936_v15  ;;  %v2480_v61 = vcombine.high %v1929_v14, %v1936_v15 }
 0x645   :  { %2696 = vmatprep.subr.bf16.mxu1 %v2695_v13  ;;  %v2699_v20 = vpack.c.bf16 %v27_v46, %v25_v18 }
 0x646   :  { %v2016_v8 = vrot.slane %v2009_v17, %v2911_v48  ;;  %v2024_v22 = vrot.slane %v2479_v16, %v2911_v48  ;;  %v2032_v47 = vrot.slane %v2025_v19, %v2911_v48  ;;  %v2040_v23 = vrot.slane %v2480_v61, %v2911_v48  ;;  %2698 = vmatpush3.bf16.msra.mxu1 %v2695_v13 }
 0x647   :  { %2700 = vmatprep.subr.bf16.mxu1 %v2699_v20 }
 0x648   :  { %v2041_v24 = vcombine.low %v2016_v8, %v2024_v22  ;;  %v2057_v25 = vcombine.low %v2032_v47, %v2040_v23  ;;  %v2042_v26 = vcombine.high %v2016_v8, %v2024_v22  ;;  %v2058_v27 = vcombine.high %v2032_v47, %v2040_v23  ;;  %v2333_v23 = vld [vmem:[%s3260_s2] sm:$0xff] }
 0x64a   :  { %v2049_v28 = vrot.slane %v2041_v24, %v2914_v55  ;;  %v2065_v29 = vrot.slane %v2057_v25, %v2914_v55  ;;  %v2056_v60 = vrot.slane %v2042_v26, %v2914_v55  ;;  %v2072_v30 = vrot.slane %v2058_v27, %v2914_v55  ;;  %2702 = vmatpush3.bf16.msra.mxu1 %v2699_v20  ;;  %v2334_v24 = vld [vmem:[%s3260_s2 + $0x8] sm:$0xff]  ;;  %v2335_v26 = vld [vmem:[%s3260_s2 + $0x10] sm:$0xff]  ;;  %v2336_v27 = vld [vmem:[%s3260_s2 + $0x18] sm:$0xff] }
 0x64b   :  { %v2703_v25 = vpack.c.bf16 %v2334_v24, %v2333_v23 }
 0x64c   :  { %v2074_v31 = vcombine.high %v2049_v28, %v2065_v29  ;;  %v2075_v35 = vcombine.low %v2056_v60, %v2072_v30  ;;  %v2076_v36 = vcombine.high %v2056_v60, %v2072_v30  ;;  %v2073_v37 = vcombine.low %v2049_v28, %v2065_v29  ;;  %v2337_v29 = vld [vmem:[%s3260_s2 + $0x20] sm:$0xff]  ;;  %v2338_v60 = vld [vmem:[%s3260_s2 + $0x28] sm:$0xff] }
 0x64d   :  { %2704 = vmatprep.subr.bf16.mxu0 %v2703_v25  ;;  %v2707_v28 = vpack.c.bf16 %v2336_v27, %v2335_v26  ;;  %v2711_v30 = vpack.c.bf16 %v2338_v60, %v2337_v29 }
 0x64e   :  { %2081 = vrot.lane.b32.xlu1 %v2074_v31, %s2828_s9  ;;  %v2339_v31 = vld [vmem:[%s3260_s2 + $0x30] sm:$0xff] }
 0x652   :  { %2089 = vrot.lane.b32.xlu1 %v2075_v35, %s2829_s10  ;;  %v2340_v35 = vld [vmem:[%s3260_s2 + $0x38] sm:$0xff]  ;;  %s2831_s2 = smov [#allocation2]  }
 0x656   :  { %2097 = vrot.lane.b32.xlu1 %v2076_v36, %s2830_s11  ;;  %v2715_v36 = vpack.c.bf16 %v2340_v35, %v2339_v31 }
 0x687   :  { %v2080_v48 = vpop.permute.xlu0 %2079 }
 0x688   :  { %v2101_v39 = vsel %vm471_vm2, %v2005_v63, %v2080_v48  ;;  %v2792_v48 = vld [vmem:[%s3261_s3] sm:$0x3f]  ;;  %s2436_s3 = sshll.u32 %s2831_s2, 4  ;;  %s2437_s3 = int_to_ptr.vmem [resolvable:$true] %s2436_s3 }
 0x689   :  { %s2793_s15 = scalar_lea.vmem %s2437_s3, 256  ;;  %p2798_p1 = scmp.lt.s32.totalorder %s2437_s3, %s2437_s3 }
 0x68a   :  { %p2794_p0 = scmp.ne.s32.totalorder %s2437_s3, %s2793_s15  ;;  %p2799_p2 = scmp.lt.s32.totalorder %s2793_s15, %s2793_s15 }
 0x68b   :  { %v2088_v38 = vpop.permute.xlu0 %2087 }
 0x68c   :  { %v2104_v41 = vsel %vm2103_vm3, %v2101_v39, %v2088_v38  ;;  %p2800_p3 = por %p2799_p2, %p2798_p1 }
 0x68e   :  { %p2801_p4 = pnand %p2800_p3, %p2794_p0 }
 0x68f   :  { %v2096_v42 = vpop.permute.xlu0 %2095 }
 0x690   :  { %v2107_v43 = vsel %vm2106_vm4, %v2104_v41, %v2096_v42 }
 0x691   :  { %2646 = vmatprep.mubr.msk.f32.mxu0 %vm29_vm0, %v2107_v43 }
 0x6c0   :  { %v2082_v55 = vpop.permute.xlu1 %2081 }
 0x6c1   :  { %v2102_v45 = vsel %vm471_vm2, %v2073_v37, %v2082_v55  ;;  %v2240_v37 = vsub.s32 2, %v2896_v32 }
 0x6c3   :  { %v2241_v38 = vrot.slane %v2792_v48, %v2240_v37 }
 0x6c4   :  { %v2090_v44 = vpop.permute.xlu1 %2089 }
 0x6c5   :  { %v2105_v49 = vsel %vm2103_vm3, %v2102_v45, %v2090_v44 }
 0x6c8   :  { %v2098_v50 = vpop.permute.xlu1 %2097 }
 0x6c9   :  { %v2108_v52 = vsel %vm2106_vm4, %v2105_v49, %v2098_v50 }
 0x6ca   :  { %2647 = vmatmul.mubr.msk.f32.vlgmr.msra.gmra.mrb[14].mxu0 %vm29_vm0, %v2108_v52 }
 0x6cb   :  { %2706 = vmatpush3.bf16.msra.mxu0 %v2703_v25 }
 0x6cc   :  { %2708 = vmatprep.subr.bf16.mxu0 %v2707_v28 }
 0x6cf   :  { %2710 = vmatpush3.bf16.msra.mxu0 %v2707_v28 }
 0x6d0   :  { %2712 = vmatprep.subr.bf16.mxu0 %v2711_v30 }
 0x6d3   :  { %2714 = vmatpush3.bf16.msra.mxu0 %v2711_v30 }
 0x6d4   :  { %2716 = vmatprep.subr.bf16.mxu0 %v2715_v36 }
 0x6d7   :  { %2718 = vmatpush3.bf16.msra.mxu0 %v2715_v36 }
 0x79d   :  { %v2648_v51 = vpop.f32.mrb[14].mxu0 }
 0x79e   :  { %v2207_v57 = vadd.f32 %v2648_v51, %v2112_v56  ;;  %v2201_v58 = vpop.f32.mrb[15].mxu0 }
 0x79f   :  { %v2202_v59 = vadd.f32 %v2201_v58, %v2112_v56  ;;  %v2343_v58 = vsub.s32 3, %v2896_v32 }
 0x7a0   :  { %v3183_v63 = vadd.f32 %v2790_v62, %v2207_v57 }
 0x7a1   :  { %v3188_v4 = vadd.f32 %v2791_v0, %v2202_v59  ;;  %v2344_v59 = vrot.slane %v2792_v48, %v2343_v58 }
 0x7a2   :  { %v2215_v9 = vsel %vm29_vm0, %v3183_v63, 0.0 }
 0x7a3   :  { %2216 = vadd.xlane.f32.xlu1 %v2215_v9  ;;  %v2212_v34 = vsel %vm29_vm0, %v3188_v4, 0.0 }
 0x7a4   :  { %2213 = vadd.xlane.f32.xlu0 %v2212_v34 }
 0x830   :  { %v2217_v2 = vpop.xlane.xlu1 %2216 }
 0x831   :  { %v2219_v53 = vmul.f32 0.03125, %v2217_v2  ;;  %v2214_v1 = vpop.xlane.xlu0 %2213 }
 0x832   :  { %v2218_v3 = vmul.f32 0.03125, %v2214_v1 }
 0x833   :  { %v2221_v6 = vsub.f32 %v3183_v63, %v2219_v53 }
 0x834   :  { %v2220_v7 = vsub.f32 %v3188_v4, %v2218_v3 }
 0x835   :  { %v2223_v11 = vmul.f32 %v2221_v6, %v2221_v6 }
 0x836   :  { %v2222_v33 = vmul.f32 %v2220_v7, %v2220_v7 }
 0x837   :  { %v2227_v40 = vsel %vm29_vm0, %v2223_v11, 0.0 }
 0x838   :  { %v2224_v10 = vsel %vm29_vm0, %v2222_v33, 0.0 }
 0x839   :  { %2225 = vadd.xlane.f32.xlu0 %v2224_v10 }
 0x83d   :  { %2228 = vadd.xlane.f32.xlu0 %v2227_v40 }
 0x8c6   :  { %v2226_v21 = vpop.xlane.xlu0 %2225 }
 0x8c7   :  { %v2230_v14 = vmul.f32 0.03125, %v2226_v21 }
 0x8c9   :  { %v2232_v15 = vadd.f32 1e-05, %v2230_v14 }
 0x8ca   :  { %v2229_v17 = vpop.xlane.xlu0 %2228 }
 0x8cb   :  { %2782 = vrsqrt.f32 %v2232_v15  ;;  %v2231_v16 = vmul.f32 0.03125, %v2229_v17 }
 0x8cd   :  { %v2233_v19 = vadd.f32 1e-05, %v2231_v16 }
 0x8cf   :  { %2784 = vrsqrt.f32 %v2233_v19 }
 0x8d5   :  { %v2783_v61 = vpop.eup %2782 }
 0x8d6   :  { %v2236_v8 = vmul.f32 %v2783_v61, %v2220_v7 }
 0x8d8   :  { %2657 = vmatprep.mubr.msk.f32.mxu1 %vm29_vm0, %v2236_v8 }
 0x8d9   :  { %v2785_v22 = vpop.eup %2784 }
 0x8da   :  { %v2237_v47 = vmul.f32 %v2785_v22, %v2221_v6 }
 0x8dc   :  { %2658 = vmatmul.mubr.msk.f32.vlgmr.msra.gmra.mrb[20].mxu1 %vm29_vm0, %v2237_v47 }
 0x9af   :  { %v2659_v39 = vpop.f32.mrb[20].mxu1 }
 0x9b0   :  { %v2320_v41 = vadd.f32 %v2659_v39, %v2241_v38  ;;  %v2314_v42 = vpop.f32.mrb[21].mxu1 }
 0x9b1   :  { %v2315_v43 = vadd.f32 %v2314_v42, %v2241_v38 }
 0x9b2   :  { %v2326_v55 = vmul.f32 0.70710677, %v2320_v41  ;;  %v2324_v56 = vmul.f32 0.5, %v2320_v41 }
 0x9b3   :  { %v2325_v44 = vmul.f32 0.70710677, %v2315_v43  ;;  %v2323_v52 = vmul.f32 0.5, %v2315_v43 }
 0x9b4   :  { %2786 = verf.f32 %v2326_v55 }
 0x9b5   :  { %2788 = verf.f32 %v2325_v44 }
 0x9be   :  { %v2787_v45 = vpop.eup %2786 }
 0x9bf   :  { %v2789_v49 = vpop.eup %2788  ;;  %v2330_v50 = vadd.f32 1.0, %v2787_v45 }
 0x9c0   :  { %v2329_v54 = vadd.f32 1.0, %v2789_v49 }
 0x9c1   :  { %v2332_v57 = vmul.f32 %v2330_v50, %v2324_v56 }
 0x9c2   :  { %v2331_v51 = vmul.f32 %v2329_v54, %v2323_v52 }
 0x9c4   :  { %2676 = vmatprep.mubr.msk.f32.mxu0 %vm2345_vm5, %v2331_v51 }
 0x9c5   :  { %2677 = vmatmul.mubr.msk.f32.vlgmr.msra.gmra.mrb[16].mxu0 %vm2345_vm5, %v2332_v57 }
 0xa98   :  { %v2678_v62 = vpop.f32.mrb[16].mxu0 }
 0xa99   :  { %v2424_v0 = vadd.f32 %v2678_v62, %v2344_v59  ;;  %v2418_v9 = vpop.f32.mrb[17].mxu0 }
 0xa9a   :  { %v2419_v34 = vadd.f32 %v2418_v9, %v2344_v59 }
 0xa9b   :  { %v2428_v2 = vadd.f32 %v2424_v0, %v3183_v63 }
 0xa9c   :  { %v2427_v53 = vadd.f32 %v2419_v34, %v3188_v4 }
 0xa9d   :  { %2430 = vst.msk [vmem:[#allocation2 + $0x8] sm:$0xff] %vm29_vm0, %v2428_v2 }
 0xa9e   :  { %2429 = vst.msk [vmem:[#allocation2] sm:$0xff] %vm29_vm0, %v2427_v53 }
 0xa9f   :  { %2804 = shalt.err (!%p2801_p4)
}
 0xaa0   :  { %s2805_s17 = scalar_lea.hbm %s3262_s4, 256 }
 0xaa1   :  { %p2806_p5 = scmp.ne.s32.totalorder %s3262_s4, %s2805_s17  ;;  %p2809_p6 = scmp.lt.u32.totalorder %s2805_s17, %s3262_s4 }
 0xaa3   :  { %p2811_p7 = pnand %p2809_p6, %p2806_p5 }
 0xaa5   :  { %2814 = shalt.err (!%p2811_p7)
}
 0xaa6   :  { %s2832_s22 = smov 128  }
 0xaa7   :  { %2442 = dma.vmem_to_hbm [thread:$0]  %s2437_s3, 256, %s3262_s4, [#allocation3], %s2832_s22, %s2832_s22, %s2828_s9  }
 0xaa8   :  { %2815 = dma.done.wait [#allocation3], 256  }
 0xaa9   :  { %2816 = vsyncadd [#allocation3], 4294967040 }
 0xaaa   :  { %2446 = vsyncpa [#allocation3], 1 }

</bundles_post_ra>
